<compile_context>
chip_gen: v5e
topology: v5e:2x2
jax: 0.10.0
libtpu: 0.0.40
codegen_flags: <defaults>
</compile_context>

<pallas_src>
import math

import jax
import jax.numpy as jnp
from jax.experimental import pallas as pl
from jax.experimental.pallas import tpu as pltpu

_LANES = 128


def _pos_add_kernel(x_ref, pe_ref, o_ref):
    # x / pe / o tiles have identical 2-D shape & dtype: pure vld + vadd + vst.
    o_ref[...] = x_ref[...] + pe_ref[...]


def _pos_add_fold_kernel(x_ref, pe_ref, o_ref):
    # x tile spans `reps` whole batch slabs; pe holds one slab -> repeat along sublanes.
    reps = x_ref.shape[0] // pe_ref.shape[0]
    o_ref[...] = x_ref[...] + jnp.tile(pe_ref[...], (reps, 1))


def _sublane_multiple(dtype) -> int:
    # f32 -> 8 sublanes, bf16/f16 -> 16, int8/fp8 -> 32.
    return max(8, 32 // jnp.dtype(dtype).itemsize)


def _pick_lane_width(flat_len: int, max_lanes: int = 1024) -> int:
    """Largest multiple of 128 that divides flat_len, capped at max_lanes."""
    c = _LANES
    while c * 2 <= max_lanes and flat_len % (c * 2) == 0:
        c *= 2
    return c


def _gen_vmem_params():
    """Generation-aware (tiling_budget_bytes, vmem_limit_bytes).

    v7x  (64 MiB physical VMEM): limit 48 MiB, budget 24 MiB.
    v5e/v6e (128 MiB):           limit 64 MiB, budget 32 MiB.
    """
    cap = 64 * 1024 * 1024  # conservative fallback (v7x-sized) if the query fails
    try:
        cap = int(pltpu.get_tpu_info().vmem_capacity_bytes)
    except Exception:
        pass
    limit = min(3 * cap // 4, 64 * 1024 * 1024)
    budget = limit // 2
    return budget, limit


def _pick_row_tile(num_rows: int, sublane: int, max_rows: int) -> int:
    """Row tile for the standard path.

    Full extent when it fits; otherwise the largest sublane-multiple <= the budget,
    preferring one that divides num_rows (no masked tail block)."""
    if num_rows <= max(max_rows, sublane):
        return num_rows
    cap = max((max_rows // sublane) * sublane, sublane)
    t, floor = cap, max(sublane, cap // 2)
    while t >= floor:
        if num_rows % t == 0:
            return t
        t -= sublane
    return cap


def _pick_fold_tile(total_rows: int, rows: int, sublane: int, max_rows: int) -> int:
    """Row tile for the batch-folded path.

    Must be a multiple of `rows` (keeps the positional repeat phase aligned) and of the
    sublane group (legal, unmasked blocks) -> step = lcm(rows, sublane).  Full extent
    when it fits; otherwise prefer a step-multiple that divides total_rows."""
    step = rows * sublane // math.gcd(rows, sublane)
    if total_rows <= max(max_rows, step):
        return total_rows
    cap = max((max_rows // step) * step, step)
    t, floor = cap, max(step, cap // 2)
    while t >= floor:
        if total_rows % t == 0:
            return t
        t -= step
    return cap


def positional_encoding(x: jax.Array, pos_table: jax.Array,
                        *, vmem_budget_bytes: int | None = None,
                        donate_x: bool = False) -> jax.Array:
    """x: (B, S, D); pos_table: (>=S, D). Returns x + pos_table[:S] per batch row."""
    B, S, D = x.shape
    # PyTorch-style type promotion (bf16 x + f32 table -> f32), hoisted out of the kernel.
    out_dtype = jnp.result_type(x.dtype, pos_table.dtype)
    pe = pos_table[:S, :].astype(out_dtype)          # arange gather == contiguous slice
    xp = x.astype(out_dtype)

    vmem_budget, vmem_limit = _gen_vmem_params()
    if vmem_budget_bytes is not None:
        vmem_budget = vmem_budget_bytes

    itemsize = jnp.dtype(out_dtype).itemsize
    sub = _sublane_multiple(out_dtype)

    # Flatten each batch slab and zero-pad up to a lane multiple so stores are always
    # lane-dense (replaces the old masked-store fallback for S*D % 128 != 0).
    flat = S * D
    flat_pad = ((flat + _LANES - 1) // _LANES) * _LANES
    x2 = xp.reshape(B, flat)
    pe1 = pe.reshape(flat)
    if flat_pad != flat:
        x2 = jnp.pad(x2, ((0, 0), (0, flat_pad - flat)))
        pe1 = jnp.pad(pe1, (0, flat_pad - flat))

    lanes = _pick_lane_width(flat_pad)
    rows = flat_pad // lanes
    pe2 = pe1.reshape(rows, lanes)

    # x, out, pe each double-buffered -> ~6 live (row_tile, lanes) tiles in VMEM.
    max_rows = max(1, vmem_budget // (6 * lanes * itemsize))
    alias_kw = {"input_output_aliases": {0: 0}} if donate_x else {}

    if rows < sub:
        # ---- Folded path: batch axis folded into the sublane axis -------------------
        total_rows = B * rows
        x3 = x2.reshape(total_rows, lanes)
        row_tile = _pick_fold_tile(total_rows, rows, sub, max_rows)
        grid = (pl.cdiv(total_rows, row_tile),)
        out3 = pl.pallas_call(
            _pos_add_fold_kernel,
            out_shape=jax.ShapeDtypeStruct((total_rows, lanes), out_dtype),
            grid=grid,
            in_specs=[
                pl.BlockSpec((row_tile, lanes), lambda i: (i, 0)),
                pl.BlockSpec((rows, lanes), lambda i: (0, 0)),   # tiny slab, resident
            ],
            out_specs=pl.BlockSpec((row_tile, lanes), lambda i: (i, 0)),
            compiler_params=pltpu.CompilerParams(
                dimension_semantics=("parallel",),
                vmem_limit_bytes=vmem_limit,
            ),
            **alias_kw,
        )(x3, pe2)
        out2 = out3.reshape(B, flat_pad)
    else:
        # ---- Standard path: (row_tiles, B) grid, batch innermost --------------------
        x3 = x2.reshape(B, rows, lanes)
        row_tile = _pick_row_tile(rows, sub, max_rows)
        row_tiles = pl.cdiv(rows, row_tile)
        out3 = pl.pallas_call(
            _pos_add_kernel,
            out_shape=jax.ShapeDtypeStruct((B, rows, lanes), out_dtype),
            # Row-tile axis OUTER: megacore shards row tiles (pe read once overall),
            # and pe's block index is constant across the inner batch axis, so each
            # positional tile is DMA'd from HBM once per row tile, not once per batch.
            grid=(row_tiles, B),
            in_specs=[
                pl.BlockSpec((None, row_tile, lanes), lambda r, b: (b, r, 0)),
                pl.BlockSpec((row_tile, lanes), lambda r, b: (r, 0)),
            ],
            out_specs=pl.BlockSpec((None, row_tile, lanes), lambda r, b: (b, r, 0)),
            compiler_params=pltpu.CompilerParams(
                dimension_semantics=("parallel", "parallel"),
                vmem_limit_bytes=vmem_limit,
            ),
            **alias_kw,
        )(x3, pe2)
        out2 = out3.reshape(B, flat_pad)

    if flat_pad != flat:
        out2 = out2[:, :flat]
    return out2.reshape(B, S, D)


def _reference(x, pos_table):
    out_dtype = jnp.result_type(x.dtype, pos_table.dtype)
    S = x.shape[1]
    return x.astype(out_dtype) + pos_table[:S, :].astype(out_dtype)[None, :, :]


if __name__ == "__main__":
    key = jax.random.PRNGKey(0)
    ks = jax.random.split(key, 10)

    # Primary: module-consistent small shapes (batch=2, seq=8, embed_dim=32).
    # rows-per-batch = 1 -> batch-folded path, single grid step.
    batch, seq, embed_dim, max_seq_len = 2, 8, 32, 16
    x = jax.random.normal(ks[0], (batch, seq, embed_dim), dtype=jnp.float32)
    tbl = jax.random.normal(ks[1], (max_seq_len + 100, embed_dim), dtype=jnp.float32)
    out = jax.block_until_ready(positional_encoding(x, tbl))
    assert out.shape == (batch, seq, embed_dim)
    assert jnp.allclose(out, _reference(x, tbl), atol=1e-6), "mismatch (primary/fold)"

    # Standard lane-dense path: multi row tile, divisor row_tile (rows=32, row_tile=8).
    x_b = jax.random.normal(ks[2], (2, 256, 128), dtype=jnp.float32)
    tbl_b = jax.random.normal(ks[3], (256 + 100, 128), dtype=jnp.float32)
    out_b = jax.block_until_ready(
        positional_encoding(x_b, tbl_b, vmem_budget_bytes=192 * 1024))
    assert jnp.allclose(out_b, _reference(x_b, tbl_b), atol=1e-6), "mismatch (tiled)"

    # Standard path with a partial tail block (rows=9, row_tile=8) — explicit test
    # of the non-divisible-rows case flagged in review.
    x_c = jax.random.normal(ks[4], (2, 72, 128), dtype=jnp.float32)
    tbl_c = jax.random.normal(ks[5], (72 + 100, 128), dtype=jnp.float32)
    out_c = jax.block_until_ready(
        positional_encoding(x_c, tbl_c, vmem_budget_bytes=192 * 1024))
    assert jnp.allclose(out_c, _reference(x_c, tbl_c), atol=1e-6), "mismatch (tail)"

    # Lane-padded path (S*D % 128 != 0): pad+slice replaces the old masked fallback.
    x_d = jax.random.normal(ks[6], (2, 8, 33), dtype=jnp.float32)
    tbl_d = jax.random.normal(ks[7], (8 + 100, 33), dtype=jnp.float32)
    out_d = jax.block_until_ready(positional_encoding(x_d, tbl_d))
    assert jnp.allclose(out_d, _reference(x_d, tbl_d), atol=1e-6), "mismatch (padded)"

    # Mixed dtype: bf16 x + f32 table -> f32 output (PyTorch-style promotion).
    x_e = jax.random.normal(ks[8], (2, 8, 32), dtype=jnp.bfloat16)
    tbl_e = jax.random.normal(ks[9], (8 + 100, 32), dtype=jnp.float32)
    out_e = jax.block_until_ready(positional_encoding(x_e, tbl_e))
    assert out_e.dtype == jnp.float32
    assert jnp.allclose(out_e, _reference(x_e, tbl_e), atol=1e-6), "mismatch (mixed dtype)"

    print("KERNEL_OK")
</pallas_src>

<mosaic_0001>
module attributes {stable_mosaic.version = 11 : i64} {
  func.func @_pos_add_fold_kernel(%arg0: i32, %arg1: memref<2x256xf32, #tpu.memory_space<vmem>>, %arg2: memref<1x256xf32, #tpu.memory_space<vmem>>, %arg3: memref<2x256xf32, #tpu.memory_space<vmem>>) attributes {dimension_semantics = [#tpu.dimension_semantics<parallel>], iteration_bounds = array<i64: 1>, scalar_prefetch = 0 : i64, scratch_operands = 0 : i64, tpu.core_type = #tpu.core_type<tc>, window_params = [{transform_indices = @transform_0, window_bounds = array<i64: 2, 256>}, {pipeline_mode = #tpu.pipeline_mode<synchronous>, transform_indices = @transform_1, window_bounds = array<i64: 1, 256>}, {transform_indices = @transform_2, window_bounds = array<i64: 2, 256>}]} {
    %c0 = arith.constant 0 : index
    %c0_0 = arith.constant 0 : index
    %0 = vector.load %arg1[%c0, %c0_0] : memref<2x256xf32, #tpu.memory_space<vmem>>, vector<2x256xf32>
    %c0_1 = arith.constant 0 : index
    %c0_2 = arith.constant 0 : index
    %1 = vector.load %arg2[%c0_1, %c0_2] : memref<1x256xf32, #tpu.memory_space<vmem>>, vector<1x256xf32>
    %2 = tpu.concatenate %1, %1 in 0 : vector<1x256xf32>, vector<1x256xf32> -> vector<2x256xf32>
    %3 = arith.addf %0, %2 : vector<2x256xf32>
    %c0_3 = arith.constant 0 : index
    %c0_4 = arith.constant 0 : index
    %4 = vector.load %arg3[%c0_3, %c0_4] : memref<2x256xf32, #tpu.memory_space<vmem>>, vector<2x256xf32>
    tpu.vector_store %arg3[%c0_3, %c0_4], %3 {strides = array<i32>} : memref<2x256xf32, #tpu.memory_space<vmem>>, vector<2x256xf32>,
    return
  }
  func.func @transform_0(%arg0: i32) -> (i32, i32) {
    %c0_i32 = arith.constant 0 : i32
    %c0_i32_0 = arith.constant 0 : i32
    return %arg0, %c0_i32 : i32, i32
  }
  func.func @transform_1(%arg0: i32) -> (i32, i32) {
    %c0_i32 = arith.constant 0 : i32
    %c0_i32_0 = arith.constant 0 : i32
    %c0_i32_1 = arith.constant 0 : i32
    return %c0_i32, %c0_i32_0 : i32, i32
  }
  func.func @transform_2(%arg0: i32) -> (i32, i32) {
    %c0_i32 = arith.constant 0 : i32
    %c0_i32_0 = arith.constant 0 : i32
    return %arg0, %c0_i32 : i32, i32
  }
}

</mosaic_0001>

<bundles_post_ra>
// kernel: tpu_custom_call.1
= control target key start
LH: loop header
LB: loop body
LE: loop exit
PB: predicated region body
PF: predicated region fallthrough
CT: control target
= control target key end

     0   :  { %7 = vsyncpa [#allocation3], 0  ;;  %s181_s0 = inlined_call_operand.hbm [shape: f32[2,256], index: 0, kind: input, shape index: {}]   ;;  %s182_s1 = inlined_call_operand.hbm [shape: f32[1,256], index: 1, kind: input, shape index: {}]   ;;  %s183_s2 = inlined_call_operand.hbm [shape: f32[2,256], index: 2, kind: output, shape index: {}]  }
   0x1   :  { %8 = vsyncpa [#allocation6], 0 }
   0x2   :  { %9 = vsyncpa [#allocation4], 0  ;;  %s15_s11 = sshll.u32 %s181_s0, 4  ;;  %s154_s12 = smov [#allocation2]   ;;  %s16_s11 = int_to_ptr.hbm [resolvable:$true] %s15_s11 }
   0x3   :  { %s17_s13 = sshll.u32 %s154_s12, 4  ;;  %s26_s16 = sshll.u32 %s182_s1, 4  ;;  %s18_s13 = int_to_ptr.vmem [resolvable:$true] %s17_s13  ;;  %s27_s16 = int_to_ptr.hbm [resolvable:$true] %s26_s16 }
   0x4   :  { %20 = dma.hbm_to_vmem [thread:$0]  %s16_s11, 64, %s18_s13, [#allocation3]  }
   0x5   :  { %s155_s17 = smov [#allocation5]  }
   0x6   :  { %s28_s18 = sshll.u32 %s155_s17, 4  ;;  %s29_s18 = int_to_ptr.vmem [resolvable:$true] %s28_s18 }
   0x7   :  { %31 = dma.hbm_to_vmem [thread:$0]  %s27_s16, 32, %s29_s18, [#allocation6]  }
   0x8   :  { %148 = dma.done.wait [#allocation3], 64  }
   0x9   :  { %149 = vsyncadd [#allocation3], 4294967232 }
   0xa   :  { %150 = dma.done.wait [#allocation6], 32  }
   0xb   :  { %151 = vsyncadd [#allocation6], 4294967264  ;;  %v41_v0 = vld [vmem:[#allocation5] sm:$0x3]  ;;  %vm50_vm0 = vcmask 1041408   ;;  %s156_s0 = smov [#allocation7]  }
   0xc   :  { %v43_v1 = vperm.slane %v41_v0, 0  ;;  %v44_v2 = vperm.slane %v41_v0, 1  ;;  %v40_v3 = vld [vmem:[#allocation2] sm:$0xf]  ;;  %s60_s19 = sshll.u32 %s156_s0, 4  ;;  %s62_s21 = sshll.u32 %s183_s2, 4  ;;  %s61_s19 = int_to_ptr.vmem [resolvable:$true] %s60_s19  ;;  %s63_s21 = int_to_ptr.hbm [resolvable:$true] %s62_s21 }
   0xe   :  { %v49_v4 = vrot.slane %v44_v2, 6 }
  0x10   :  { %v51_v5 = vsel %vm50_vm0, %v43_v1, %v49_v4 }
  0x11   :  { %v53_v6 = vadd.f32 %v51_v5, %v40_v3 }
  0x13   :  { %54 = vst [vmem:[#allocation7] sm:$0xf] %v53_v6 }
  0x14   :  { %65 = dma.vmem_to_hbm [thread:$0]  %s61_s19, 64, %s63_s21, [#allocation4]  }
  0x15   :  { %152 = dma.done.wait [#allocation4], 64  }
  0x16   :  { %153 = vsyncadd [#allocation4], 4294967232 }
  0x17   :  { %70 = vsyncpa [#allocation3], 1 }
  0x18   :  { %71 = vsyncpa [#allocation6], 1 }
  0x19   :  { %72 = vsyncpa [#allocation4], 1 }

</bundles_post_ra>
